<compile_context>
chip_gen: v7x
topology: tpu7x:2x2x1
jax: 0.10.0
libtpu: 0.0.40
codegen_flags: <defaults>
</compile_context>

<pallas_src>
import jax
import jax.numpy as jnp
from jax import lax
from jax.experimental import pallas as pl
from jax.experimental.pallas import tpu as pltpu

_VMEM_LIMIT = 48 * 1024 * 1024          # safe on v7x (64 MiB/TC), roomy on v5e/v6e
_TARGET_BLOCK_BYTES = 4 * 1024 * 1024   # ~4 MiB output blocks: low per-step overhead


def _round_up(x: int, m: int) -> int:
    return ((x + m - 1) // m) * m


def _sublane_align(dtype) -> int:
    # Second-minor block dims must be multiples of the dtype's sublane packing:
    # 8 for 4-byte, 16 for 2-byte, 32 for 1-byte dtypes.
    return max(8, 32 // jnp.dtype(dtype).itemsize)


def _pick_row_tile(n_rows: int, bytes_per_row: int, align: int) -> int:
    """Rows per block so each output block is ~_TARGET_BLOCK_BYTES."""
    tr = max(align, (_TARGET_BLOCK_BYTES // max(bytes_per_row, 1)) // align * align)
    return min(tr, _round_up(n_rows, align))


# ---------------------------------------------------------------------------
# Kernels
# ---------------------------------------------------------------------------

def _one_hot_rowcol_kernel(idx_ref, out_ref):
    """Rows (tokens) on grid axis 0, classes on grid axis 1.

    idx_ref: (TN, 1) int32 -- token ids for this row tile (same for every j)
    out_ref: (TN, TC)      -- one-hot for classes [j*TC, (j+1)*TC)
    """
    j = pl.program_id(1)
    tc = out_ref.shape[1]
    classes = lax.broadcasted_iota(jnp.int32, out_ref.shape, 1) + j * tc
    out_ref[...] = (idx_ref[...] == classes).astype(out_ref.dtype)


def _one_hot_slab_kernel(idx_ref, expand_ref, out_ref):
    """Lane-dense one-hot for small power-of-two C (8 <= C < 128).

    The (N, C) output is viewed as an (N*C//128, 128) slab; each slab row
    packs K = 128 // C consecutive tokens, so every store is a full-width,
    unmasked vst.  The expansion idx_exp[r, l] = idx[r, l // C] runs on the
    (otherwise idle) MXU via a tiny constant matrix expand[t, l] = 1 iff
    l // C == t, leaving ~a compare + cast of VPU work per vreg.

    idx_ref:    (TR, K)  int32
    expand_ref: (K, 128) float32 constant
    out_ref:    (TR, 128)
    """
    tr, lanes = out_ref.shape
    k = idx_ref.shape[1]
    c = lanes // k
    # f32 is exact for every value involved (valid indices are < C <= 64).
    idx_exp = jnp.dot(idx_ref[...].astype(jnp.float32), expand_ref[...],
                      preferred_element_type=jnp.float32)
    # C is a power of two, so `% c` lowers to a cheap lane-index mask.
    class_f = (lax.broadcasted_iota(jnp.int32, (tr, lanes), 1) % c).astype(jnp.float32)
    out_ref[...] = (idx_exp == class_f).astype(out_ref.dtype)


# ---------------------------------------------------------------------------
# Wrappers
# ---------------------------------------------------------------------------

def _one_hot_small_c_slab(idx_flat, n, c, dtype):
    """C in {8,16,32,64} and n divisible by 128//C: lane-dense slab layout."""
    k = 128 // c
    rows = n // k                                  # exact (caller guarantees)
    align = _sublane_align(dtype)
    tr = _pick_row_tile(rows, 128 * jnp.dtype(dtype).itemsize, align)

    idx2d = idx_flat.reshape(rows, k)
    expand = (jnp.arange(128)[None, :] // c
              == jnp.arange(k)[:, None]).astype(jnp.float32)

    slab = pl.pallas_call(
        _one_hot_slab_kernel,
        out_shape=jax.ShapeDtypeStruct((rows, 128), dtype),
        grid=(pl.cdiv(rows, tr),),
        in_specs=[pl.BlockSpec((tr, k), lambda i: (i, 0)),
                  pl.BlockSpec((k, 128), lambda i: (0, 0))],
        out_specs=pl.BlockSpec((tr, 128), lambda i: (i, 0)),
        compiler_params=pltpu.CompilerParams(
            dimension_semantics=("parallel",),
            vmem_limit_bytes=_VMEM_LIMIT),
    )(idx2d, expand)
    # Slab flat order == (N, C) flat order; no padding was added, no slice.
    return slab.reshape(n, c)


def _one_hot_general(idx_flat, n, c, dtype):
    """General path: tile tokens; tile classes in 128-lane chunks when C >= 128."""
    itemsize = jnp.dtype(dtype).itemsize
    align = _sublane_align(dtype)

    if c >= 128:
        tc = min(2048, (c // 128) * 128)   # lane-dense class tiles (<= c)
    else:
        tc = c                             # full-C block (masked stores), no padding
    c_grid = pl.cdiv(c, tc)

    tn = _pick_row_tile(n, tc * itemsize, align)
    n_grid = pl.cdiv(n, tn)

    idx2d = idx_flat.reshape(n, 1)

    return pl.pallas_call(
        _one_hot_rowcol_kernel,
        out_shape=jax.ShapeDtypeStruct((n, c), dtype),
        grid=(n_grid, c_grid),
        in_specs=[
            # idx block ignores the class-tile axis -> DMA'd once per row tile.
            pl.BlockSpec((tn, 1), lambda i, j: (i, 0)),
        ],
        out_specs=pl.BlockSpec((tn, tc), lambda i, j: (i, j)),
        compiler_params=pltpu.CompilerParams(
            dimension_semantics=("parallel", "parallel"),
            vmem_limit_bytes=_VMEM_LIMIT),
    )(idx2d)


def one_hot(indices: jax.Array, num_classes: int = -1, *,
            dtype=jnp.int32) -> jax.Array:
    """Pallas one-hot. indices: integer array of any shape -> [..., num_classes].

    dtype=jnp.int32 by default (PyTorch returns int64 with identical values).
    dtype=jnp.int8 (or jnp.bool_) is the fast path: the kernel is purely
    HBM-write bound, so narrower outputs are ~4x faster end to end.
    """
    if num_classes == -1:
        # PyTorch behaviour: infer from data.  Forces a device->host sync —
        # pass num_classes explicitly in hot / jitted code.
        num_classes = int(jax.device_get(jnp.max(indices))) + 1
    c = int(num_classes)

    orig_shape = indices.shape
    idx_flat = indices.reshape(-1).astype(jnp.int32)
    n = int(idx_flat.shape[0])
    # TODO(synk): PyTorch raises on negative / >= num_classes indices; here
    # they silently produce all-zero rows (no device-side assert on TPU).

    if 8 <= c < 128 and 128 % c == 0 and n % (128 // c) == 0:
        out2d = _one_hot_small_c_slab(idx_flat, n, c, dtype)
    else:
        out2d = _one_hot_general(idx_flat, n, c, dtype)

    return out2d.reshape(*orig_shape, c)


# ---------------------------------------------------------------------------
# Self-test
# ---------------------------------------------------------------------------

if __name__ == "__main__":
    key = jax.random.PRNGKey(0)
    k1, k2, k3, k4 = jax.random.split(key, 4)

    # Case 1: small power-of-two C -> lane-dense slab + MXU-expansion path.
    x1 = jax.random.randint(k1, (2, 8), 0, 16, dtype=jnp.int32)
    y1 = jax.block_until_ready(one_hot(x1, num_classes=16))
    assert y1.shape == (2, 8, 16) and y1.dtype == jnp.int32
    assert bool(jnp.all(y1 == jax.nn.one_hot(x1, 16, dtype=jnp.int32)))

    # Case 2: wide C (class-tiled path), C a multiple of 128.
    x2 = jax.random.randint(k2, (2, 8), 0, 256, dtype=jnp.int32)
    y2 = jax.block_until_ready(one_hot(x2, num_classes=256))
    assert y2.shape == (2, 8, 256)
    assert bool(jnp.all(y2 == jax.nn.one_hot(x2, 256, dtype=jnp.int32)))

    # Case 3: small C that does not divide 128 (full-C ragged fallback).
    x3 = jax.random.randint(k3, (4, 4), 0, 10, dtype=jnp.int32)
    y3 = jax.block_until_ready(one_hot(x3, num_classes=10))
    assert y3.shape == (4, 4, 10)
    assert bool(jnp.all(y3 == jax.nn.one_hot(x3, 10, dtype=jnp.int32)))

    # Case 4: int8 fast path (~4x less HBM writeback).
    x4 = jax.random.randint(k4, (2, 8), 0, 256, dtype=jnp.int32)
    y4 = jax.block_until_ready(one_hot(x4, num_classes=256, dtype=jnp.int8))
    assert y4.shape == (2, 8, 256) and y4.dtype == jnp.int8
    assert bool(jnp.all(y4.astype(jnp.int32)
                        == jax.nn.one_hot(x4, 256, dtype=jnp.int32)))

    print("KERNEL_OK")
</pallas_src>

<mosaic_0001>
module attributes {stable_mosaic.version = 11 : i64} {
  func.func @_one_hot_slab_kernel(%arg0: i32, %arg1: memref<8x8xi32, #tpu.memory_space<vmem>>, %arg2: memref<8x128xf32, #tpu.memory_space<vmem>>, %arg3: memref<8x128xi32, #tpu.memory_space<vmem>>) attributes {dimension_semantics = [#tpu.dimension_semantics<parallel>], iteration_bounds = array<i64: 1>, scalar_prefetch = 0 : i64, scratch_operands = 0 : i64, tpu.core_type = #tpu.core_type<tc>, window_params = [{transform_indices = @transform_0, window_bounds = array<i64: 8, 8>}, {pipeline_mode = #tpu.pipeline_mode<synchronous>, transform_indices = @transform_1, window_bounds = array<i64: 8, 128>}, {transform_indices = @transform_2, window_bounds = array<i64: 8, 128>}]} {
    %c0 = arith.constant 0 : index
    %c0_0 = arith.constant 0 : index
    %0 = vector.load %arg1[%c0, %c0_0] : memref<8x8xi32, #tpu.memory_space<vmem>>, vector<8x8xi32>
    %1 = arith.sitofp %0 : vector<8x8xi32> to vector<8x8xf32>
    %c0_1 = arith.constant 0 : index
    %c0_2 = arith.constant 0 : index
    %2 = vector.load %arg2[%c0_1, %c0_2] : memref<8x128xf32, #tpu.memory_space<vmem>>, vector<8x128xf32>
    %cst = arith.constant dense<0.000000e+00> : vector<8x128xf32>
    %3 = tpu.matmul %1, %2, %cst {dimension_numbers = #tpu.dot_dimension_numbers<[1], [0], [0], [1], [0, 0, 1, 1], [], []>} : vector<8x8xf32>, vector<8x128xf32>, vector<8x128xf32> -> vector<8x128xf32>
    %4 = tpu.iota {dimensions = array<i32: 1>} : vector<8x128xi32>
    %c16_i32 = arith.constant 16 : i32
    %c0_i32 = arith.constant 0 : i32
    %5 = arith.cmpi eq, %c16_i32, %c0_i32 : i32
    %c1_i32 = arith.constant 1 : i32
    %6 = arith.select %5, %c1_i32, %c16_i32 : i32
    %7 = vector.broadcast %6 : i32 to vector<8x128xi32>
    %8 = arith.remsi %4, %7 : vector<8x128xi32>
    %c0_i32_3 = arith.constant 0 : i32
    %9 = vector.broadcast %c0_i32_3 : i32 to vector<8x128xi32>
    %10 = arith.cmpi ne, %8, %9 : vector<8x128xi32>
    %c0_i32_4 = arith.constant 0 : i32
    %11 = vector.broadcast %c0_i32_4 : i32 to vector<8x128xi32>
    %12 = arith.cmpi slt, %8, %11 : vector<8x128xi32>
    %c0_i32_5 = arith.constant 0 : i32
    %13 = arith.cmpi slt, %6, %c0_i32_5 : i32
    %14 = vector.broadcast %13 : i1 to vector<8x128xi1>
    %15 = vector.broadcast %14 : vector<8x128xi1> to vector<8x128xi1>
    %16 = arith.xori %12, %15 : vector<8x128xi1>
    %17 = arith.andi %16, %10 : vector<8x128xi1>
    %18 = vector.broadcast %6 : i32 to vector<8x128xi32>
    %19 = arith.addi %8, %18 : vector<8x128xi32>
    %20 = arith.select %17, %19, %8 : vector<8x128xi1>, vector<8x128xi32>
    %21 = arith.sitofp %20 : vector<8x128xi32> to vector<8x128xf32>
    %22 = arith.cmpf oeq, %3, %21 : vector<8x128xf32>
    %23 = arith.extui %22 : vector<8x128xi1> to vector<8x128xi32>
    %c0_6 = arith.constant 0 : index
    %c0_7 = arith.constant 0 : index
    %24 = vector.load %arg3[%c0_6, %c0_7] : memref<8x128xi32, #tpu.memory_space<vmem>>, vector<8x128xi32>
    tpu.vector_store %arg3[%c0_6, %c0_7], %23 {strides = array<i32>} : memref<8x128xi32, #tpu.memory_space<vmem>>, vector<8x128xi32>,
    return
  }
  func.func @transform_0(%arg0: i32) -> (i32, i32) {
    %c0_i32 = arith.constant 0 : i32
    %c0_i32_0 = arith.constant 0 : i32
    return %arg0, %c0_i32 : i32, i32
  }
  func.func @transform_1(%arg0: i32) -> (i32, i32) {
    %c0_i32 = arith.constant 0 : i32
    %c0_i32_0 = arith.constant 0 : i32
    %c0_i32_1 = arith.constant 0 : i32
    return %c0_i32, %c0_i32_0 : i32, i32
  }
  func.func @transform_2(%arg0: i32) -> (i32, i32) {
    %c0_i32 = arith.constant 0 : i32
    %c0_i32_0 = arith.constant 0 : i32
    return %arg0, %c0_i32 : i32, i32
  }
}

</mosaic_0001>

<bundles_post_ra>
// kernel: tpu_custom_call.1
= control target key start
LH: loop header
LB: loop body
LE: loop exit
PB: predicated region body
PF: predicated region fallthrough
CT: control target
= control target key end

     0   :  { %7 = vsyncpa [#allocation3], 0  ;;  %s304_s0 = inlined_call_operand.hbm [shape: s32[2,8], index: 0, kind: input, shape index: {}]   ;;  %s305_s1 = inlined_call_operand.hbm [shape: f32[8,128], index: 1, kind: input, shape index: {}]   ;;  %s306_s2 = inlined_call_operand.hbm [shape: s32[2,128], index: 2, kind: output, shape index: {}]  }
   0x1   :  { %8 = vsyncpa [#allocation6], 0 }
   0x2   :  { %9 = vsyncpa [#allocation4], 0 }
   0x3   :  { %14 = vsyncadd [#allocation3], 96  ;;  %s239_s9 = smov [#allocation2]   ;;  %s167_s13 = scalar_lea.hbm %s304_s0, 32 }
   0x4   :  { %s15_s10 = sshll.u32 %s239_s9, 4  ;;  %p168_p0 = scmp.ne.s32.totalorder %s304_s0, %s167_s13  ;;  %s16_s10 = int_to_ptr.vmem [resolvable:$true] %s15_s10 }
   0x5   :  { %p171_p1 = scmp.lt.u32.totalorder %s167_s13, %s304_s0 }
   0x7   :  { %p173_p2 = pnand %p171_p1, %p168_p0 }
   0x9   :  { %176 = shalt.err (!%p173_p2)
}
   0xa   :  { %s177_s18 = scalar_lea.vmem %s16_s10, 32  ;;  %s181_s19 = scalar_lea.vmem %s16_s10, 128 }
   0xb   :  { %p178_p3 = scmp.ne.s32.totalorder %s16_s10, %s177_s18  ;;  %p182_p4 = scmp.lt.s32.totalorder %s16_s10, %s16_s10 }
   0xc   :  { %p183_p5 = scmp.lt.s32.totalorder %s181_s19, %s177_s18 }
   0xe   :  { %p184_p6 = por %p183_p5, %p182_p4 }
  0x10   :  { %p185_p7 = pnand %p184_p6, %p178_p3 }
  0x12   :  { %188 = shalt.err (!%p185_p7)
}
  0x13   :  { %s240_s20 = smov 32   ;;  %s241_s21 = smov 2  }
  0x14   :  { %21 = dma.hbm_to_vmem [thread:$0]  %s304_s0, 32, %s16_s10, [#allocation3], %s240_s20, %s240_s20, %s241_s21  }
  0x15   :  { %s242_s24 = smov [#allocation5]   ;;  %s189_s28 = scalar_lea.hbm %s305_s1, 128 }
  0x16   :  { %s28_s25 = sshll.u32 %s242_s24, 4  ;;  %p190_p8 = scmp.ne.s32.totalorder %s305_s1, %s189_s28  ;;  %s29_s25 = int_to_ptr.vmem [resolvable:$true] %s28_s25 }
  0x17   :  { %p193_p9 = scmp.lt.u32.totalorder %s189_s28, %s305_s1 }
  0x19   :  { %p195_p10 = pnand %p193_p9, %p190_p8 }
  0x1b   :  { %198 = shalt.err (!%p195_p10)
}
  0x1c   :  { %s199_s5 = scalar_lea.vmem %s29_s25, 128  ;;  %p204_p12 = scmp.lt.s32.totalorder %s29_s25, %s29_s25 }
  0x1d   :  { %p200_p11 = scmp.ne.s32.totalorder %s29_s25, %s199_s5  ;;  %p205_p13 = scmp.lt.s32.totalorder %s199_s5, %s199_s5 }
  0x1f   :  { %p206_p0 = por %p205_p13, %p204_p12 }
  0x21   :  { %p207_p1 = pnand %p206_p0, %p200_p11 }
  0x23   :  { %210 = shalt.err (!%p207_p1)
}
  0x24   :  { %31 = dma.hbm_to_vmem [thread:$0]  %s305_s1, 128, %s29_s25, [#allocation6]  }
  0x25   :  { %233 = dma.done.wait [#allocation3], 128  }
  0x26   :  { %234 = vsyncadd [#allocation3], 4294967168 }
  0x27   :  { %235 = dma.done.wait [#allocation6], 128  }
  0x28   :  { %236 = vsyncadd [#allocation6], 4294967168  ;;  %v243_v0 = vmov 0.0   ;;  %vm244_vm0 = vmmov 0   ;;  %v40_v1 = vld [vmem:[#allocation5] sm:$0xff]  ;;  %v38_v2 = vld [vmem:[#allocation2] sm:$0xff]  ;;  %v115_v4 = vlaneseq }
  0x29   :  { %154 = vmatprep.subr.mxu0 %v243_v0  ;;  %156 = vmatprep.mubr.msk.f32.mxu0 %vm244_vm0, %v243_v0  ;;  %vm41_vm1 = vcmask 64512   ;;  %v39_v3 = vcvt.s32.f32 %v38_v2  ;;  %v245_v10 = vmov 0  }
  0x2a   :  { %155 = vmatpush3.msra.mxu0 %v40_v1  ;;  %v116_v5 = vand.u32 127, %v115_v4 }
  0x2b   :  { %157 = vmatmul.mubr.msk.f32.vlgmr.msra.gmra.mrb[0].mxu0 %vm41_vm1, %v39_v3 }
  0x2c   :  { %v121_v6 = vand.u32 15, %v116_v5 }
  0x2e   :  { %v129_v7 = vcvt.s32.f32 %v121_v6 }
  0xfe   :  { %v111_v8 = vpop.f32.mrb[0].mxu0 }
  0xff   :  { %vm130_vm2 = vcmp.eq.f32.partialorder %v111_v8, %v129_v7  ;;  %v158_v9 = vpop.f32.mrb[1].mxu0 }
 0x100   :  { %v131_v11 = vsel %vm130_vm2, 1, %v245_v10 }
 0x101   :  { %132 = vst [vmem:[#allocation7] sm:$0xff] %v131_v11 }
 0x102   :  { %137 = vsyncadd [#allocation4], 96  ;;  %s246_s1 = smov [#allocation7]  }
 0x103   :  { %s138_s7 = sshll.u32 %s246_s1, 4  ;;  %s139_s7 = int_to_ptr.vmem [resolvable:$true] %s138_s7 }
 0x104   :  { %s211_s8 = scalar_lea.vmem %s139_s7, 32  ;;  %s215_s9 = scalar_lea.vmem %s139_s7, 128 }
 0x105   :  { %p212_p2 = scmp.ne.s32.totalorder %s139_s7, %s211_s8  ;;  %p216_p3 = scmp.lt.s32.totalorder %s139_s7, %s139_s7 }
 0x106   :  { %p217_p4 = scmp.lt.s32.totalorder %s215_s9, %s211_s8 }
 0x108   :  { %p218_p5 = por %p217_p4, %p216_p3 }
 0x10a   :  { %p219_p6 = pnand %p218_p5, %p212_p2 }
 0x10c   :  { %222 = shalt.err (!%p219_p6)
}
 0x10d   :  { %s223_s12 = scalar_lea.hbm %s306_s2, 32 }
 0x10e   :  { %p224_p7 = scmp.ne.s32.totalorder %s306_s2, %s223_s12  ;;  %p227_p8 = scmp.lt.u32.totalorder %s223_s12, %s306_s2 }
 0x110   :  { %p229_p9 = pnand %p227_p8, %p224_p7 }
 0x112   :  { %232 = shalt.err (!%p229_p9)
}
 0x113   :  { %144 = dma.vmem_to_hbm [thread:$0]  %s139_s7, 32, %s306_s2, [#allocation4], %s240_s20, %s240_s20, %s241_s21  }
 0x114   :  { %237 = dma.done.wait [#allocation4], 128  }
 0x115   :  { %238 = vsyncadd [#allocation4], 4294967168 }
 0x116   :  { %148 = vsyncpa [#allocation3], 1 }
 0x117   :  { %149 = vsyncpa [#allocation6], 1 }
 0x118   :  { %150 = vsyncpa [#allocation4], 1 }

</bundles_post_ra>
